<compile_context>
chip_gen: v6e
topology: v6e:2x2x1
jax: 0.10.0
libtpu: 0.0.40
codegen_flags: <defaults>
</compile_context>

<pallas_src>
import jax
import jax.numpy as jnp
from jax.experimental import pallas as pl
from jax.experimental.pallas import tpu as pltpu

_LANE = 128
# Below this size: one un-gridded block (fixed call overhead dominates; no
# pipelining needed, VMEM use <= 2 MiB which is safe on every generation).
_GRIDLESS_BYTES = 1 * 1024 * 1024
# Odd-sized (not a multiple of 128) arrays up to this size are handled as one
# full-array block (block shape == array shape, exempt from (8,128) rule).
_ODD_GRIDLESS_BYTES = 2 * 1024 * 1024
# Tiled path: ~4 MiB per block; double-buffered in+out = ~16 MiB VMEM.
_TILE_BYTES = 4 * 1024 * 1024
_TILED_VMEM_LIMIT = 32 * 1024 * 1024


def _relu_kernel(x_ref, o_ref):
    # Pure VPU elementwise max(x, 0) over the whole VMEM tile.
    o_ref[...] = jnp.maximum(x_ref[...], jnp.zeros((), x_ref.dtype))


def _cost(n: int, itemsize: int) -> pl.CostEstimate:
    # n compares, no transcendentals, one read + one write of the tensor.
    return pl.CostEstimate(flops=n, transcendentals=0,
                           bytes_accessed=2 * n * itemsize)


def _sublane_floor(itemsize: int) -> int:
    # Sub-32-bit dtypes pack along sublanes: f32 -> 8, bf16 -> 16, int8/fp8 -> 32.
    return max(8, 32 // max(1, itemsize))


def _widest_lane_factorization(m: int, rows_floor: int) -> int:
    """Largest divisor k of m such that rows = m // k stays >= rows_floor
    (if possible).  The slab is (m // k, 128 * k): wide lane dim -> long
    unmasked stores, rows >= rows_floor -> sublanes stay packed.
    Trace-time Python, O(sqrt(m))."""
    best_k = 1
    d = 1
    while d * d <= m:
        if m % d == 0:
            for k in (d, m // d):
                if (m // k) >= rows_floor or m < rows_floor:
                    if k > best_k:
                        best_k = k
        d += 1
    return best_k


def _relu_aligned(x_flat: jax.Array, n: int, dtype, itemsize: int,
                  donate: bool) -> jax.Array:
    """ReLU on a flat array whose length is a multiple of 128. Returns flat."""
    floor = _sublane_floor(itemsize)
    aliases = {0: 0} if donate else {}

    # ---------- Gridless fast path: one lane-dense block, no pipelining ----------
    if n * itemsize <= _GRIDLESS_BYTES:
        m = n // _LANE
        k = _widest_lane_factorization(m, floor)
        rows, width = m // k, _LANE * k
        x2d = x_flat.reshape(rows, width)
        out2d = pl.pallas_call(
            _relu_kernel,
            out_shape=jax.ShapeDtypeStruct((rows, width), dtype),
            cost_estimate=_cost(n, itemsize),
            input_output_aliases=aliases,
        )(x2d)
        return out2d.reshape(-1)

    # ---------- Tiled, software-pipelined path (streams HBM<->VMEM) ----------
    width = _LANE
    for w in (2048, 1024, 512, 256, 128):
        if n % w == 0:
            width = w
            break
    rows = n // width
    block_rows = max(floor, (_TILE_BYTES // (width * itemsize)) // floor * floor)
    if block_rows >= rows:
        block_rows = rows  # single full block -> exempt from (8,128) rule
    grid = (pl.cdiv(rows, block_rows),)  # ragged last block is masked by Pallas

    x2d = x_flat.reshape(rows, width)
    out2d = pl.pallas_call(
        _relu_kernel,
        out_shape=jax.ShapeDtypeStruct((rows, width), dtype),
        grid=grid,
        in_specs=[pl.BlockSpec((block_rows, width), lambda i: (i, 0))],
        out_specs=pl.BlockSpec((block_rows, width), lambda i: (i, 0)),
        compiler_params=pltpu.CompilerParams(
            dimension_semantics=("parallel",),
            vmem_limit_bytes=_TILED_VMEM_LIMIT,
        ),
        cost_estimate=_cost(n, itemsize),
        input_output_aliases=aliases,
    )(x2d)
    return out2d.reshape(-1)


def relu_pallas(x: jax.Array, *, donate: bool = False) -> jax.Array:
    """ReLU over an arbitrary-shaped array using a Pallas TPU kernel.

    Set donate=True only when the caller actually donates the input buffer
    (e.g. jax.jit(..., donate_argnums=...)); otherwise the in/out alias would
    force XLA to make a defensive copy.
    """
    orig_shape = x.shape
    dtype = x.dtype
    n = x.size
    if n == 0:
        return x
    itemsize = jnp.dtype(dtype).itemsize
    x_flat = x.reshape(-1)

    if n % _LANE == 0:
        return _relu_aligned(x_flat, n, dtype, itemsize, donate).reshape(orig_shape)

    # ---------- Not a multiple of 128 ----------
    if n * itemsize <= _ODD_GRIDLESS_BYTES:
        # One full-array block: block shape == array shape, so it is exempt
        # from the (8,128) divisibility rule.  No pad, no tail slice.
        x2d = x_flat.reshape(1, n)
        out2d = pl.pallas_call(
            _relu_kernel,
            out_shape=jax.ShapeDtypeStruct((1, n), dtype),
            cost_estimate=_cost(n, itemsize),
            input_output_aliases={0: 0} if donate else {},
        )(x2d)
        return out2d.reshape(orig_shape)

    # Large and ragged: stream the 128-aligned bulk through the tiled kernel,
    # handle the (<128-element) tail with a plain max, and join.  The concat is
    # one extra copy but avoids whole-array pad + slice round trips.
    n_main = (n // _LANE) * _LANE
    main = _relu_aligned(x_flat[:n_main], n_main, dtype, itemsize, donate=False)
    tail = jnp.maximum(x_flat[n_main:], jnp.zeros((), dtype))
    return jnp.concatenate([main, tail]).reshape(orig_shape)


if __name__ == "__main__":
    # Shape from the PyTorch module's input: [1, 1664, 7, 7] (~320 KiB f32)
    # -> single gridless lane-dense block (13 x 6272).
    x651 = jax.random.normal(jax.random.PRNGKey(0), (1, 1664, 7, 7),
                             dtype=jnp.float32)
    x652 = relu_pallas(x651)
    jax.block_until_ready(x652)
    assert x652.shape == x651.shape
    assert x652.dtype == x651.dtype
    assert bool(jnp.allclose(x652, jnp.maximum(x651, 0.0)))

    # Odd size (105 elements, not a multiple of 128): one full-array block,
    # no padding, no tail slice.
    x_odd = jax.random.normal(jax.random.PRNGKey(1), (3, 5, 7), dtype=jnp.float32)
    y_odd = relu_pallas(x_odd)
    jax.block_until_ready(y_odd)
    assert bool(jnp.allclose(y_odd, jnp.maximum(x_odd, 0.0)))

    # ~5 MiB input: exercises the tiled, pipelined path with a ragged last block
    # (rows=637, block_rows=512, grid=2).
    x_big = jax.random.normal(jax.random.PRNGKey(2), (1, 1664, 28, 28),
                              dtype=jnp.float32)
    y_big = relu_pallas(x_big)
    jax.block_until_ready(y_big)
    assert bool(jnp.allclose(y_big, jnp.maximum(x_big, 0.0)))

    print("KERNEL_OK")
</pallas_src>

<mosaic_0001>
module attributes {stable_mosaic.version = 11 : i64} {
  func.func @_relu_kernel(%arg0: memref<13x6272xf32, #tpu.memory_space<vmem>>, %arg1: memref<13x6272xf32, #tpu.memory_space<vmem>>) attributes {dimension_semantics = [], scalar_prefetch = 0 : i64, scratch_operands = 0 : i64, tpu.core_type = #tpu.core_type<tc>} {
    %c0 = arith.constant 0 : index
    %c0_0 = arith.constant 0 : index
    %0 = vector.load %arg0[%c0, %c0_0] : memref<13x6272xf32, #tpu.memory_space<vmem>>, vector<13x6272xf32>
    %cst = arith.constant 0.000000e+00 : f32
    %1 = vector.broadcast %cst : f32 to vector<13x6272xf32>
    %2 = arith.maximumf %0, %1 : vector<13x6272xf32>
    %c0_1 = arith.constant 0 : index
    %c0_2 = arith.constant 0 : index
    %3 = vector.load %arg1[%c0_1, %c0_2] : memref<13x6272xf32, #tpu.memory_space<vmem>>, vector<13x6272xf32>
    tpu.vector_store %arg1[%c0_1, %c0_2], %2 {strides = array<i32>} : memref<13x6272xf32, #tpu.memory_space<vmem>>, vector<13x6272xf32>,
    return
  }
}

</mosaic_0001>

<bundles_post_ra>
// kernel: tpu_custom_call.1
= control target key start
LH: loop header
LB: loop body
LE: loop exit
PB: predicated region body
PF: predicated region fallthrough
CT: control target
= control target key end

     0   :  { %6 = vsyncpa [#allocation3], 0  ;;  %s411_s0 = inlined_call_operand.hbm [shape: f32[13,6272], index: 0, kind: input, shape index: {}]   ;;  %s412_s1 = inlined_call_operand.hbm [shape: f32[13,6272], index: 1, kind: output, shape index: {}]  }
   0x1   :  { %7 = vsyncpa [#allocation4], 0  ;;  %s382_s6 = smov [#allocation2]  }
   0x2   :  { %s13_s7 = sshll.u32 %s382_s6, 4  ;;  %s14_s7 = int_to_ptr.vmem [resolvable:$true] %s13_s7 }
   0x3   :  { %s346_s8 = scalar_lea.vmem %s14_s7, 12544  ;;  %p351_p1 = scmp.lt.s32.totalorder %s14_s7, %s14_s7 }
   0x4   :  { %p347_p0 = scmp.ne.s32.totalorder %s14_s7, %s346_s8  ;;  %p352_p2 = scmp.lt.s32.totalorder %s346_s8, %s346_s8 }
   0x6   :  { %p353_p3 = por %p352_p2, %p351_p1 }
   0x8   :  { %p354_p4 = pnand %p353_p3, %p347_p0 }
   0xa   :  { %357 = shalt.err (!%p354_p4)
}
   0xb   :  { %s383_s9 = smov 6272   ;;  %s384_s10 = smov 392  }
   0xc   :  { %19 = dma.hbm_to_vmem [thread:$0]  %s411_s0, 12544, %s14_s7, [#allocation3], %s383_s9, %s383_s9, %s384_s10  }
   0xd   :  { %378 = dma.done.wait [#allocation3], 12544  }
   0xe   :  { %379 = vsyncadd [#allocation3], 4294954752  ;;  %v23_v0 = vld [vmem:[#allocation2] sm:$0xff]  ;;  %v24_v1 = vld [vmem:[#allocation2 + $0x8] sm:$0xff]  ;;  %s385_s13 = smov [#allocation5]  }
   0xf   :  { %v25_v2 = vld [vmem:[#allocation2 + $0x10] sm:$0xff]  ;;  %s402_s14 = sshll.u32 %s385_s13, 4  ;;  %v121_v3 = vmax.f32 %v23_v0, 0.0  ;;  %v122_v4 = vmax.f32 %v24_v1, 0.0  ;;  %v26_v6 = vld [vmem:[#allocation2 + $0x18] sm:$0xff]  ;;  %v27_v7 = vld [vmem:[#allocation2 + $0x20] sm:$0xff]  ;;  %s323_s14 = int_to_ptr.vmem [resolvable:$true] %s402_s14 }
  0x10   :  { %v123_v5 = vmax.f32 %v25_v2, 0.0  ;;  %v28_v8 = vld [vmem:[#allocation2 + $0x28] sm:$0xff]  ;;  %v124_v9 = vmax.f32 %v26_v6, 0.0  ;;  %v125_v10 = vmax.f32 %v27_v7, 0.0  ;;  %v29_v12 = vld [vmem:[#allocation2 + $0x30] sm:$0xff]  ;;  %v30_v13 = vld [vmem:[#allocation2 + $0x38] sm:$0xff]  ;;  %p363_p6 = scmp.lt.s32.totalorder %s323_s14, %s323_s14 }
  0x11   :  { %v126_v11 = vmax.f32 %v28_v8, 0.0  ;;  %v31_v14 = vld [vmem:[#allocation2 + $0x40] sm:$0xff]  ;;  %219 = vst [vmem:[#allocation5] sm:$0xff] %v121_v3  ;;  %220 = vst [vmem:[#allocation5 + $0x8] sm:$0xff] %v122_v4  ;;  %v127_v15 = vmax.f32 %v29_v12, 0.0  ;;  %v128_v16 = vmax.f32 %v30_v13, 0.0 }
  0x12   :  { %221 = vst [vmem:[#allocation5 + $0x10] sm:$0xff] %v123_v5  ;;  %v129_v17 = vmax.f32 %v31_v14, 0.0  ;;  %v32_v18 = vld [vmem:[#allocation2 + $0x48] sm:$0xff]  ;;  %v33_v19 = vld [vmem:[#allocation2 + $0x50] sm:$0xff]  ;;  %v34_v20 = vld [vmem:[#allocation2 + $0x58] sm:$0xff]  ;;  %s358_s0 = scalar_lea.vmem %s323_s14, 12544 }
  0x13   :  { %222 = vst [vmem:[#allocation5 + $0x18] sm:$0xff] %v124_v9  ;;  %223 = vst [vmem:[#allocation5 + $0x20] sm:$0xff] %v125_v10  ;;  %v130_v21 = vmax.f32 %v32_v18, 0.0  ;;  %v131_v22 = vmax.f32 %v33_v19, 0.0  ;;  %v132_v23 = vmax.f32 %v34_v20, 0.0  ;;  %v35_v24 = vld [vmem:[#allocation2 + $0x60] sm:$0xff]  ;;  %p359_p5 = scmp.ne.s32.totalorder %s323_s14, %s358_s0  ;;  %p364_p7 = scmp.lt.s32.totalorder %s358_s0, %s358_s0 }
  0x14   :  { %224 = vst [vmem:[#allocation5 + $0x28] sm:$0xff] %v126_v11  ;;  %v36_v25 = vld [vmem:[#allocation2 + $0x68] sm:$0xff]  ;;  %v37_v26 = vld [vmem:[#allocation2 + $0x70] sm:$0xff]  ;;  %225 = vst [vmem:[#allocation5 + $0x30] sm:$0xff] %v127_v15  ;;  %v133_v27 = vmax.f32 %v35_v24, 0.0 }
  0x15   :  { %226 = vst [vmem:[#allocation5 + $0x38] sm:$0xff] %v128_v16  ;;  %227 = vst [vmem:[#allocation5 + $0x40] sm:$0xff] %v129_v17  ;;  %v134_v28 = vmax.f32 %v36_v25, 0.0  ;;  %v135_v29 = vmax.f32 %v37_v26, 0.0  ;;  %v38_v30 = vld [vmem:[#allocation2 + $0x78] sm:$0xff]  ;;  %v39_v31 = vld [vmem:[#allocation2 + $0x80] sm:$0xff]  ;;  %p365_p8 = por %p364_p7, %p363_p6 }
  0x16   :  { %v40_v32 = vld [vmem:[#allocation2 + $0x88] sm:$0xff]  ;;  %228 = vst [vmem:[#allocation5 + $0x48] sm:$0xff] %v130_v21  ;;  %229 = vst [vmem:[#allocation5 + $0x50] sm:$0xff] %v131_v22  ;;  %v136_v33 = vmax.f32 %v38_v30, 0.0  ;;  %v137_v34 = vmax.f32 %v39_v31, 0.0  ;;  %v41_v36 = vld [vmem:[#allocation2 + $0x90] sm:$0xff] }
  0x17   :  { %230 = vst [vmem:[#allocation5 + $0x58] sm:$0xff] %v132_v23  ;;  %v138_v35 = vmax.f32 %v40_v32, 0.0  ;;  %v42_v37 = vld [vmem:[#allocation2 + $0x98] sm:$0xff]  ;;  %v43_v38 = vld [vmem:[#allocation2 + $0xa0] sm:$0xff]  ;;  %231 = vst [vmem:[#allocation5 + $0x60] sm:$0xff] %v133_v27  ;;  %v139_v39 = vmax.f32 %v41_v36, 0.0  ;;  %p366_p9 = pnand %p365_p8, %p359_p5 }
  0x18   :  { %232 = vst [vmem:[#allocation5 + $0x68] sm:$0xff] %v134_v28  ;;  %233 = vst [vmem:[#allocation5 + $0x70] sm:$0xff] %v135_v29  ;;  %v140_v40 = vmax.f32 %v42_v37, 0.0  ;;  %v141_v41 = vmax.f32 %v43_v38, 0.0  ;;  %v44_v42 = vld [vmem:[#allocation2 + $0xa8] sm:$0xff]  ;;  %v45_v43 = vld [vmem:[#allocation2 + $0xb0] sm:$0xff] }
  0x19   :  { %v46_v44 = vld [vmem:[#allocation2 + $0xb8] sm:$0xff]  ;;  %234 = vst [vmem:[#allocation5 + $0x78] sm:$0xff] %v136_v33  ;;  %235 = vst [vmem:[#allocation5 + $0x80] sm:$0xff] %v137_v34  ;;  %v142_v45 = vmax.f32 %v44_v42, 0.0  ;;  %v143_v46 = vmax.f32 %v45_v43, 0.0  ;;  %v47_v48 = vld [vmem:[#allocation2 + $0xc0] sm:$0xff] }
  0x1a   :  { %236 = vst [vmem:[#allocation5 + $0x88] sm:$0xff] %v138_v35  ;;  %v144_v47 = vmax.f32 %v46_v44, 0.0  ;;  %v48_v49 = vld [vmem:[#allocation2 + $0xc8] sm:$0xff]  ;;  %v49_v50 = vld [vmem:[#allocation2 + $0xd0] sm:$0xff]  ;;  %237 = vst [vmem:[#allocation5 + $0x90] sm:$0xff] %v139_v39  ;;  %v145_v51 = vmax.f32 %v47_v48, 0.0 }
  0x1b   :  { %238 = vst [vmem:[#allocation5 + $0x98] sm:$0xff] %v140_v40  ;;  %239 = vst [vmem:[#allocation5 + $0xa0] sm:$0xff] %v141_v41  ;;  %v146_v52 = vmax.f32 %v48_v49, 0.0  ;;  %v147_v53 = vmax.f32 %v49_v50, 0.0  ;;  %v50_v54 = vld [vmem:[#allocation2 + $0xd8] sm:$0xff]  ;;  %v51_v55 = vld [vmem:[#allocation2 + $0xe0] sm:$0xff] }
  0x1c   :  { %v52_v56 = vld [vmem:[#allocation2 + $0xe8] sm:$0xff]  ;;  %240 = vst [vmem:[#allocation5 + $0xa8] sm:$0xff] %v142_v45  ;;  %241 = vst [vmem:[#allocation5 + $0xb0] sm:$0xff] %v143_v46  ;;  %v148_v57 = vmax.f32 %v50_v54, 0.0  ;;  %v149_v58 = vmax.f32 %v51_v55, 0.0  ;;  %v53_v60 = vld [vmem:[#allocation2 + $0xf0] sm:$0xff] }
  0x1d   :  { %242 = vst [vmem:[#allocation5 + $0xb8] sm:$0xff] %v144_v47  ;;  %v150_v59 = vmax.f32 %v52_v56, 0.0  ;;  %v54_v61 = vld [vmem:[#allocation2 + $0xf8] sm:$0xff]  ;;  %v55_v62 = vld [vmem:[#allocation2 + $0x100] sm:$0xff]  ;;  %243 = vst [vmem:[#allocation5 + $0xc0] sm:$0xff] %v145_v51  ;;  %v151_v63 = vmax.f32 %v53_v60, 0.0 }
  0x1e   :  { %244 = vst [vmem:[#allocation5 + $0xc8] sm:$0xff] %v146_v52  ;;  %245 = vst [vmem:[#allocation5 + $0xd0] sm:$0xff] %v147_v53  ;;  %v152_v0 = vmax.f32 %v54_v61, 0.0  ;;  %v153_v1 = vmax.f32 %v55_v62, 0.0  ;;  %v56_v2 = vld [vmem:[#allocation2 + $0x108] sm:$0xff]  ;;  %v57_v3 = vld [vmem:[#allocation2 + $0x110] sm:$0xff] }
  0x1f   :  { %v58_v4 = vld [vmem:[#allocation2 + $0x118] sm:$0xff]  ;;  %246 = vst [vmem:[#allocation5 + $0xd8] sm:$0xff] %v148_v57  ;;  %247 = vst [vmem:[#allocation5 + $0xe0] sm:$0xff] %v149_v58  ;;  %v154_v5 = vmax.f32 %v56_v2, 0.0  ;;  %v155_v6 = vmax.f32 %v57_v3, 0.0  ;;  %v59_v8 = vld [vmem:[#allocation2 + $0x120] sm:$0xff] }
  0x20   :  { %248 = vst [vmem:[#allocation5 + $0xe8] sm:$0xff] %v150_v59  ;;  %v156_v7 = vmax.f32 %v58_v4, 0.0  ;;  %v60_v9 = vld [vmem:[#allocation2 + $0x128] sm:$0xff]  ;;  %v61_v10 = vld [vmem:[#allocation2 + $0x130] sm:$0xff]  ;;  %249 = vst [vmem:[#allocation5 + $0xf0] sm:$0xff] %v151_v63  ;;  %v157_v11 = vmax.f32 %v59_v8, 0.0 }
  0x21   :  { %250 = vst [vmem:[#allocation5 + $0xf8] sm:$0xff] %v152_v0  ;;  %251 = vst [vmem:[#allocation5 + $0x100] sm:$0xff] %v153_v1  ;;  %v158_v12 = vmax.f32 %v60_v9, 0.0  ;;  %v159_v13 = vmax.f32 %v61_v10, 0.0  ;;  %v62_v14 = vld [vmem:[#allocation2 + $0x138] sm:$0xff]  ;;  %v63_v15 = vld [vmem:[#allocation2 + $0x140] sm:$0xff] }
  0x22   :  { %v64_v16 = vld [vmem:[#allocation2 + $0x148] sm:$0xff]  ;;  %252 = vst [vmem:[#allocation5 + $0x108] sm:$0xff] %v154_v5  ;;  %253 = vst [vmem:[#allocation5 + $0x110] sm:$0xff] %v155_v6  ;;  %v160_v17 = vmax.f32 %v62_v14, 0.0  ;;  %v161_v18 = vmax.f32 %v63_v15, 0.0  ;;  %v65_v20 = vld [vmem:[#allocation2 + $0x150] sm:$0xff] }
  0x23   :  { %254 = vst [vmem:[#allocation5 + $0x118] sm:$0xff] %v156_v7  ;;  %v162_v19 = vmax.f32 %v64_v16, 0.0  ;;  %v66_v21 = vld [vmem:[#allocation2 + $0x158] sm:$0xff]  ;;  %v67_v22 = vld [vmem:[#allocation2 + $0x160] sm:$0xff]  ;;  %255 = vst [vmem:[#allocation5 + $0x120] sm:$0xff] %v157_v11  ;;  %v163_v23 = vmax.f32 %v65_v20, 0.0 }
  0x24   :  { %256 = vst [vmem:[#allocation5 + $0x128] sm:$0xff] %v158_v12  ;;  %257 = vst [vmem:[#allocation5 + $0x130] sm:$0xff] %v159_v13  ;;  %v164_v24 = vmax.f32 %v66_v21, 0.0  ;;  %v165_v25 = vmax.f32 %v67_v22, 0.0  ;;  %v68_v26 = vld [vmem:[#allocation2 + $0x168] sm:$0xff]  ;;  %v69_v27 = vld [vmem:[#allocation2 + $0x170] sm:$0xff] }
  0x25   :  { %v70_v28 = vld [vmem:[#allocation2 + $0x178] sm:$0xff]  ;;  %258 = vst [vmem:[#allocation5 + $0x138] sm:$0xff] %v160_v17  ;;  %259 = vst [vmem:[#allocation5 + $0x140] sm:$0xff] %v161_v18  ;;  %v166_v29 = vmax.f32 %v68_v26, 0.0  ;;  %v167_v30 = vmax.f32 %v69_v27, 0.0  ;;  %v71_v32 = vld [vmem:[#allocation2 + $0x180] sm:$0xff] }
  0x26   :  { %260 = vst [vmem:[#allocation5 + $0x148] sm:$0xff] %v162_v19  ;;  %v168_v31 = vmax.f32 %v70_v28, 0.0  ;;  %v72_v33 = vld [vmem:[#allocation2 + $0x188] sm:$0x1f]  ;;  %261 = vst [vmem:[#allocation5 + $0x150] sm:$0xff] %v163_v23  ;;  %v169_v34 = vmax.f32 %v71_v32, 0.0 }
  0x27   :  { %262 = vst [vmem:[#allocation5 + $0x158] sm:$0xff] %v164_v24  ;;  %263 = vst [vmem:[#allocation5 + $0x160] sm:$0xff] %v165_v25  ;;  %v170_v35 = vmax.f32 %v72_v33, 0.0  ;;  %v73_v36 = vld [vmem:[#allocation2 + $0x190] sm:$0x1f] }
  0x28   :  { %v74_v37 = vld [vmem:[#allocation2 + $0x198] sm:$0x1f]  ;;  %264 = vst [vmem:[#allocation5 + $0x168] sm:$0xff] %v166_v29  ;;  %265 = vst [vmem:[#allocation5 + $0x170] sm:$0xff] %v167_v30  ;;  %v171_v38 = vmax.f32 %v73_v36, 0.0 }
  0x29   :  { %266 = vst [vmem:[#allocation5 + $0x178] sm:$0xff] %v168_v31  ;;  %v172_v39 = vmax.f32 %v74_v37, 0.0  ;;  %v75_v40 = vld [vmem:[#allocation2 + $0x1a0] sm:$0x1f]  ;;  %v76_v41 = vld [vmem:[#allocation2 + $0x1a8] sm:$0x1f] }
  0x2a   :  { %267 = vst [vmem:[#allocation5 + $0x180] sm:$0xff] %v169_v34  ;;  %268 = vst [vmem:[#allocation5 + $0x188] sm:$0x1f] %v170_v35  ;;  %v173_v42 = vmax.f32 %v75_v40, 0.0  ;;  %v174_v43 = vmax.f32 %v76_v41, 0.0 }
  0x2b   :  { %v77_v44 = vld [vmem:[#allocation2 + $0x1b0] sm:$0x1f]  ;;  %v78_v45 = vld [vmem:[#allocation2 + $0x1b8] sm:$0x1f]  ;;  %269 = vst [vmem:[#allocation5 + $0x190] sm:$0x1f] %v171_v38 }
  0x2c   :  { %270 = vst [vmem:[#allocation5 + $0x198] sm:$0x1f] %v172_v39  ;;  %v175_v46 = vmax.f32 %v77_v44, 0.0  ;;  %v176_v47 = vmax.f32 %v78_v45, 0.0  ;;  %v79_v48 = vld [vmem:[#allocation2 + $0x1c0] sm:$0x1f] }
  0x2d   :  { %v80_v49 = vld [vmem:[#allocation2 + $0x1c8] sm:$0x1f]  ;;  %271 = vst [vmem:[#allocation5 + $0x1a0] sm:$0x1f] %v173_v42  ;;  %272 = vst [vmem:[#allocation5 + $0x1a8] sm:$0x1f] %v174_v43 }
  0x2e   :  { %v177_v50 = vmax.f32 %v79_v48, 0.0  ;;  %v178_v51 = vmax.f32 %v80_v49, 0.0  ;;  %v81_v52 = vld [vmem:[#allocation2 + $0x1d0] sm:$0x1f]  ;;  %v82_v53 = vld [vmem:[#allocation2 + $0x1d8] sm:$0x1f] }
  0x2f   :  { %273 = vst [vmem:[#allocation5 + $0x1b0] sm:$0x1f] %v175_v46  ;;  %274 = vst [vmem:[#allocation5 + $0x1b8] sm:$0x1f] %v176_v47  ;;  %v179_v54 = vmax.f32 %v81_v52, 0.0  ;;  %v180_v55 = vmax.f32 %v82_v53, 0.0 }
  0x30   :  { %v83_v56 = vld [vmem:[#allocation2 + $0x1e0] sm:$0x1f]  ;;  %v84_v57 = vld [vmem:[#allocation2 + $0x1e8] sm:$0x1f]  ;;  %275 = vst [vmem:[#allocation5 + $0x1c0] sm:$0x1f] %v177_v50 }
  0x31   :  { %276 = vst [vmem:[#allocation5 + $0x1c8] sm:$0x1f] %v178_v51  ;;  %v181_v58 = vmax.f32 %v83_v56, 0.0  ;;  %v182_v59 = vmax.f32 %v84_v57, 0.0  ;;  %v85_v60 = vld [vmem:[#allocation2 + $0x1f0] sm:$0x1f] }
  0x32   :  { %v86_v61 = vld [vmem:[#allocation2 + $0x1f8] sm:$0x1f]  ;;  %277 = vst [vmem:[#allocation5 + $0x1d0] sm:$0x1f] %v179_v54  ;;  %278 = vst [vmem:[#allocation5 + $0x1d8] sm:$0x1f] %v180_v55 }
  0x33   :  { %v183_v62 = vmax.f32 %v85_v60, 0.0  ;;  %v184_v63 = vmax.f32 %v86_v61, 0.0  ;;  %v87_v0 = vld [vmem:[#allocation2 + $0x200] sm:$0x1f]  ;;  %v88_v1 = vld [vmem:[#allocation2 + $0x208] sm:$0x1f] }
  0x34   :  { %279 = vst [vmem:[#allocation5 + $0x1e0] sm:$0x1f] %v181_v58  ;;  %280 = vst [vmem:[#allocation5 + $0x1e8] sm:$0x1f] %v182_v59  ;;  %v185_v2 = vmax.f32 %v87_v0, 0.0  ;;  %v186_v3 = vmax.f32 %v88_v1, 0.0 }
  0x35   :  { %v89_v4 = vld [vmem:[#allocation2 + $0x210] sm:$0x1f]  ;;  %v90_v5 = vld [vmem:[#allocation2 + $0x218] sm:$0x1f]  ;;  %281 = vst [vmem:[#allocation5 + $0x1f0] sm:$0x1f] %v183_v62 }
  0x36   :  { %282 = vst [vmem:[#allocation5 + $0x1f8] sm:$0x1f] %v184_v63  ;;  %v187_v6 = vmax.f32 %v89_v4, 0.0  ;;  %v188_v7 = vmax.f32 %v90_v5, 0.0  ;;  %v91_v8 = vld [vmem:[#allocation2 + $0x220] sm:$0x1f] }
  0x37   :  { %v92_v9 = vld [vmem:[#allocation2 + $0x228] sm:$0x1f]  ;;  %283 = vst [vmem:[#allocation5 + $0x200] sm:$0x1f] %v185_v2  ;;  %284 = vst [vmem:[#allocation5 + $0x208] sm:$0x1f] %v186_v3 }
  0x38   :  { %v189_v10 = vmax.f32 %v91_v8, 0.0  ;;  %v190_v11 = vmax.f32 %v92_v9, 0.0  ;;  %v93_v12 = vld [vmem:[#allocation2 + $0x230] sm:$0x1f]  ;;  %v94_v13 = vld [vmem:[#allocation2 + $0x238] sm:$0x1f] }
  0x39   :  { %285 = vst [vmem:[#allocation5 + $0x210] sm:$0x1f] %v187_v6  ;;  %286 = vst [vmem:[#allocation5 + $0x218] sm:$0x1f] %v188_v7  ;;  %v191_v14 = vmax.f32 %v93_v12, 0.0  ;;  %v192_v15 = vmax.f32 %v94_v13, 0.0 }
  0x3a   :  { %v95_v16 = vld [vmem:[#allocation2 + $0x240] sm:$0x1f]  ;;  %v96_v17 = vld [vmem:[#allocation2 + $0x248] sm:$0x1f]  ;;  %287 = vst [vmem:[#allocation5 + $0x220] sm:$0x1f] %v189_v10 }
  0x3b   :  { %288 = vst [vmem:[#allocation5 + $0x228] sm:$0x1f] %v190_v11  ;;  %v193_v18 = vmax.f32 %v95_v16, 0.0  ;;  %v194_v19 = vmax.f32 %v96_v17, 0.0  ;;  %v97_v20 = vld [vmem:[#allocation2 + $0x250] sm:$0x1f] }
  0x3c   :  { %v98_v21 = vld [vmem:[#allocation2 + $0x258] sm:$0x1f]  ;;  %289 = vst [vmem:[#allocation5 + $0x230] sm:$0x1f] %v191_v14  ;;  %290 = vst [vmem:[#allocation5 + $0x238] sm:$0x1f] %v192_v15 }
  0x3d   :  { %v195_v22 = vmax.f32 %v97_v20, 0.0  ;;  %v196_v23 = vmax.f32 %v98_v21, 0.0  ;;  %v99_v24 = vld [vmem:[#allocation2 + $0x260] sm:$0x1f]  ;;  %v100_v25 = vld [vmem:[#allocation2 + $0x268] sm:$0x1f] }
  0x3e   :  { %291 = vst [vmem:[#allocation5 + $0x240] sm:$0x1f] %v193_v18  ;;  %292 = vst [vmem:[#allocation5 + $0x248] sm:$0x1f] %v194_v19  ;;  %v197_v26 = vmax.f32 %v99_v24, 0.0  ;;  %v198_v27 = vmax.f32 %v100_v25, 0.0 }
  0x3f   :  { %v101_v28 = vld [vmem:[#allocation2 + $0x270] sm:$0x1f]  ;;  %v102_v29 = vld [vmem:[#allocation2 + $0x278] sm:$0x1f]  ;;  %293 = vst [vmem:[#allocation5 + $0x250] sm:$0x1f] %v195_v22 }
  0x40   :  { %294 = vst [vmem:[#allocation5 + $0x258] sm:$0x1f] %v196_v23  ;;  %v199_v30 = vmax.f32 %v101_v28, 0.0  ;;  %v200_v31 = vmax.f32 %v102_v29, 0.0  ;;  %v103_v32 = vld [vmem:[#allocation2 + $0x280] sm:$0x1f] }
  0x41   :  { %v104_v33 = vld [vmem:[#allocation2 + $0x288] sm:$0x1f]  ;;  %295 = vst [vmem:[#allocation5 + $0x260] sm:$0x1f] %v197_v26  ;;  %296 = vst [vmem:[#allocation5 + $0x268] sm:$0x1f] %v198_v27 }
  0x42   :  { %v201_v34 = vmax.f32 %v103_v32, 0.0  ;;  %v202_v35 = vmax.f32 %v104_v33, 0.0  ;;  %v105_v36 = vld [vmem:[#allocation2 + $0x290] sm:$0x1f]  ;;  %v106_v37 = vld [vmem:[#allocation2 + $0x298] sm:$0x1f] }
  0x43   :  { %297 = vst [vmem:[#allocation5 + $0x270] sm:$0x1f] %v199_v30  ;;  %298 = vst [vmem:[#allocation5 + $0x278] sm:$0x1f] %v200_v31  ;;  %v203_v38 = vmax.f32 %v105_v36, 0.0  ;;  %v204_v39 = vmax.f32 %v106_v37, 0.0 }
  0x44   :  { %v107_v40 = vld [vmem:[#allocation2 + $0x2a0] sm:$0x1f]  ;;  %v108_v41 = vld [vmem:[#allocation2 + $0x2a8] sm:$0x1f]  ;;  %299 = vst [vmem:[#allocation5 + $0x280] sm:$0x1f] %v201_v34 }
  0x45   :  { %300 = vst [vmem:[#allocation5 + $0x288] sm:$0x1f] %v202_v35  ;;  %v205_v42 = vmax.f32 %v107_v40, 0.0  ;;  %v206_v43 = vmax.f32 %v108_v41, 0.0  ;;  %v109_v44 = vld [vmem:[#allocation2 + $0x2b0] sm:$0x1f] }
  0x46   :  { %v110_v45 = vld [vmem:[#allocation2 + $0x2b8] sm:$0x1f]  ;;  %301 = vst [vmem:[#allocation5 + $0x290] sm:$0x1f] %v203_v38  ;;  %302 = vst [vmem:[#allocation5 + $0x298] sm:$0x1f] %v204_v39 }
  0x47   :  { %v207_v46 = vmax.f32 %v109_v44, 0.0  ;;  %v208_v47 = vmax.f32 %v110_v45, 0.0  ;;  %v111_v48 = vld [vmem:[#allocation2 + $0x2c0] sm:$0x1f]  ;;  %v112_v49 = vld [vmem:[#allocation2 + $0x2c8] sm:$0x1f] }
  0x48   :  { %303 = vst [vmem:[#allocation5 + $0x2a0] sm:$0x1f] %v205_v42  ;;  %304 = vst [vmem:[#allocation5 + $0x2a8] sm:$0x1f] %v206_v43  ;;  %v209_v50 = vmax.f32 %v111_v48, 0.0  ;;  %v210_v51 = vmax.f32 %v112_v49, 0.0 }
  0x49   :  { %v113_v52 = vld [vmem:[#allocation2 + $0x2d0] sm:$0x1f]  ;;  %v114_v53 = vld [vmem:[#allocation2 + $0x2d8] sm:$0x1f]  ;;  %305 = vst [vmem:[#allocation5 + $0x2b0] sm:$0x1f] %v207_v46 }
  0x4a   :  { %306 = vst [vmem:[#allocation5 + $0x2b8] sm:$0x1f] %v208_v47  ;;  %v211_v54 = vmax.f32 %v113_v52, 0.0  ;;  %v212_v55 = vmax.f32 %v114_v53, 0.0  ;;  %v115_v56 = vld [vmem:[#allocation2 + $0x2e0] sm:$0x1f] }
  0x4b   :  { %v116_v57 = vld [vmem:[#allocation2 + $0x2e8] sm:$0x1f]  ;;  %307 = vst [vmem:[#allocation5 + $0x2c0] sm:$0x1f] %v209_v50  ;;  %308 = vst [vmem:[#allocation5 + $0x2c8] sm:$0x1f] %v210_v51 }
  0x4c   :  { %v213_v58 = vmax.f32 %v115_v56, 0.0  ;;  %v214_v59 = vmax.f32 %v116_v57, 0.0  ;;  %v117_v60 = vld [vmem:[#allocation2 + $0x2f0] sm:$0x1f]  ;;  %v118_v61 = vld [vmem:[#allocation2 + $0x2f8] sm:$0x1f] }
  0x4d   :  { %309 = vst [vmem:[#allocation5 + $0x2d0] sm:$0x1f] %v211_v54  ;;  %310 = vst [vmem:[#allocation5 + $0x2d8] sm:$0x1f] %v212_v55  ;;  %v215_v62 = vmax.f32 %v117_v60, 0.0  ;;  %v216_v63 = vmax.f32 %v118_v61, 0.0 }
  0x4e   :  { %v119_v0 = vld [vmem:[#allocation2 + $0x300] sm:$0x1f]  ;;  %v120_v1 = vld [vmem:[#allocation2 + $0x308] sm:$0x1f]  ;;  %311 = vst [vmem:[#allocation5 + $0x2e0] sm:$0x1f] %v213_v58 }
  0x4f   :  { %312 = vst [vmem:[#allocation5 + $0x2e8] sm:$0x1f] %v214_v59  ;;  %v217_v2 = vmax.f32 %v119_v0, 0.0  ;;  %v218_v3 = vmax.f32 %v120_v1, 0.0  ;;  %313 = vst [vmem:[#allocation5 + $0x2f0] sm:$0x1f] %v215_v62 }
  0x50   :  { %314 = vst [vmem:[#allocation5 + $0x2f8] sm:$0x1f] %v216_v63 }
  0x51   :  { %315 = vst [vmem:[#allocation5 + $0x300] sm:$0x1f] %v217_v2  ;;  %316 = vst [vmem:[#allocation5 + $0x308] sm:$0x1f] %v218_v3 }
  0x52   :  { %369 = shalt.err (!%p366_p9)
}
  0x53   :  { %328 = dma.vmem_to_hbm [thread:$0]  %s323_s14, 12544, %s412_s1, [#allocation4], %s383_s9, %s383_s9, %s384_s10  }
  0x54   :  { %380 = dma.done.wait [#allocation4], 12544  }
  0x55   :  { %381 = vsyncadd [#allocation4], 4294954752 }
  0x56   :  { %332 = vsyncpa [#allocation3], 1 }
  0x57   :  { %333 = vsyncpa [#allocation4], 1 }

</bundles_post_ra>
